<compile_context>
chip_gen: v6e
topology: v6e:2x2x1
jax: 0.10.0
libtpu: 0.0.40
codegen_flags: <defaults>
</compile_context>

<pallas_src>
import functools
import math

import jax
import jax.numpy as jnp
from jax.experimental import pallas as pl
from jax.experimental.pallas import tpu as pltpu

SELU_ALPHA = 1.6732632423543772
SELU_SCALE = 1.0507009873554805


def _cdiv(a, b):
    return (a + b - 1) // b


def _round_up(n, m):
    return _cdiv(n, m) * m


def _apply_activation(y, kind):
    if kind == "selu":
        # exp only on the (clamped) negative branch: EUP-slot transcendental,
        # no overflow in the untaken branch.
        return SELU_SCALE * jnp.where(
            y > 0, y, SELU_ALPHA * (jnp.exp(jnp.minimum(y, 0.0)) - 1.0))
    if kind == "relu":
        return jnp.maximum(y, 0.0)
    if kind == "sigmoid":
        return jax.nn.sigmoid(y)
    if kind == "tanh":
        return jnp.tanh(y)
    if kind == "none":
        return y
    raise ValueError("Unknown non-linearity type")


# ----------------------------------------------------------------------------
# Fused kernel: one (tile, slab_feat) slab -> (linear + act) for every layer.
# refs = (x_ref, w0_ref, b0_ref, w1_ref, b1_ref, ..., o_ref)
# ----------------------------------------------------------------------------
def fused_ae_kernel(*refs, acts):
    x_ref = refs[0]
    o_ref = refs[-1]
    wb = refs[1:-1]

    h = x_ref[...]                                        # (tile, feat*pack) bf16
    for li, act in enumerate(acts):
        wT = wb[2 * li][...]                              # (in*pack, out*pack) bf16
        b = wb[2 * li + 1][...]                           # (1,  out*pack)      f32
        y = jnp.dot(h.astype(wT.dtype), wT,               # MXU: bf16 in, f32 acc
                    preferred_element_type=jnp.float32)
        h = _apply_activation(y + b, act)                 # epilogue in f32
    o_ref[...] = h.astype(o_ref.dtype)


# ----------------------------------------------------------------------------
# One-time parameter packing (hoisted out of the per-forward path).
# ----------------------------------------------------------------------------
def pack_params(encode_w, encode_b, decode_b, layer_sizes, nl_type="selu",
                last_layer_activations=True, compute_dtype=jnp.bfloat16):
    feat = layer_sizes[0]
    pack = (128 // feat) if (feat < 128 and 128 % feat == 0) else 1

    last = len(encode_w) - 1
    layers = []
    # encode: F.linear(x, w, b) = x @ w.T + b  -> operand wT = w.T  (in, out)
    for i, w in enumerate(encode_w):
        layers.append((w.T, encode_b[i], nl_type))
    # decode (constrained): weight = w.transpose(0,1) -> x @ w, so operand = w
    for i, w in enumerate(list(reversed(encode_w))):
        act = nl_type if (i != last or last_layer_activations) else "none"
        layers.append((w, decode_b[i], act))

    params_flat, acts = [], []
    for wT, b, act in layers:
        wT = wT.astype(jnp.float32)
        b = b.astype(jnp.float32)
        if pack > 1:
            # Block-diagonal packing: [r0 | r1] @ kron(I, W) = [r0@W | r1@W]
            wT = jnp.kron(jnp.eye(pack, dtype=jnp.float32), wT)
            b = jnp.tile(b, pack)
        params_flat.append(wT.astype(compute_dtype))
        params_flat.append(b.reshape(1, -1))               # bias kept f32
        acts.append(act)
    return tuple(params_flat), tuple(acts), pack, feat


# ----------------------------------------------------------------------------
# Forward wrapper: bf16 lane-dense slab, cdiv grid (ragged last block masked),
# generation-aware tile + explicit VMEM budget.
# ----------------------------------------------------------------------------
@functools.partial(
    jax.jit, static_argnames=("acts", "pack", "feat", "max_tile", "out_dtype"))
def _fused_forward(x, params_flat, *, acts, pack, feat, max_tile,
                   out_dtype=jnp.bfloat16):
    B = x.shape[0]
    slab_feat = feat * pack
    row_align = 16                      # bf16 sublane tiling is (16, 128)

    # bf16 cast + pad + reshape fuse into one cheap XLA pass (no f32 staging copy).
    slab_rows = _cdiv(B, pack)
    slab_rows_p = _round_up(max(slab_rows, 1), row_align)
    b_pad = slab_rows_p * pack
    x = x.astype(jnp.bfloat16)
    if b_pad != B:
        x = jnp.pad(x, ((0, b_pad - B), (0, 0)))
    x_slab = x.reshape(slab_rows_p, slab_feat)              # row-major, pure layout

    # ---- tile selection -----------------------------------------------------
    max_tile = max(row_align, _round_up(max_tile, row_align))
    min_tile = 256          # keep per-step DMA well above the ~0.35us fixed cost
    target_steps = 8        # >=4 grid steps per TensorCore on v7x's 2-TC megacore
    if slab_rows_p <= max_tile:
        tile = slab_rows_p                                  # single resident block
    else:
        n_full = _cdiv(slab_rows_p, max_tile)
        steps = max(n_full, target_steps)
        tile_raw = _round_up(_cdiv(slab_rows_p, steps), row_align)
        tile = min(max_tile, max(min_tile, tile_raw))
    grid = _cdiv(slab_rows_p, tile)                         # ragged last block OK

    # ---- explicit VMEM budget: 2x-buffered IO blocks + resident params +
    #      unrolled f32 layer intermediates; clamp to stay safe on v7x (64 MiB).
    bytes_io = 2 * 2 * tile * slab_feat * 2                           # in+out, bf16
    bytes_params = 2 * sum(math.prod(p.shape) * jnp.dtype(p.dtype).itemsize
                           for p in params_flat)
    bytes_tmp = 6 * tile * slab_feat * 4                              # f32 temporaries
    vmem_limit = int(1.5 * (bytes_io + bytes_params + bytes_tmp))
    vmem_limit = min(max(vmem_limit, 8 << 20), 48 << 20)

    in_specs = [pl.BlockSpec((tile, slab_feat), lambda i: (i, 0))]
    for p in params_flat:                       # grid-invariant, VMEM resident
        in_specs.append(pl.BlockSpec(p.shape, lambda i: (0, 0)))

    out_slab = pl.pallas_call(
        functools.partial(fused_ae_kernel, acts=acts),
        out_shape=jax.ShapeDtypeStruct((slab_rows_p, slab_feat), out_dtype),
        grid=(grid,),
        in_specs=in_specs,
        out_specs=pl.BlockSpec((tile, slab_feat), lambda i: (i, 0)),
        compiler_params=pltpu.CompilerParams(
            dimension_semantics=("parallel",),
            vmem_limit_bytes=vmem_limit),
    )(x_slab, *params_flat)

    return out_slab.reshape(b_pad, feat)[:B]


def autoencoder_forward(x, params_flat, acts, pack, feat, max_tile=2048,
                        out_dtype=jnp.bfloat16):
    return _fused_forward(x, params_flat, acts=acts, pack=pack, feat=feat,
                          max_tile=max_tile, out_dtype=out_dtype)


# ----------------------------------------------------------------------------
# Parameter init mirroring the PyTorch __init__ shapes, and a pure-JAX f32
# reference for correctness checking.
# ----------------------------------------------------------------------------
def make_autoencoder_params(layer_sizes, key):
    encode_w, encode_b = [], []
    keys = jax.random.split(key, len(layer_sizes) - 1)
    for i in range(len(layer_sizes) - 1):
        fan_in, fan_out = layer_sizes[i], layer_sizes[i + 1]
        bound = (6.0 / (fan_in + fan_out)) ** 0.5
        w = jax.random.uniform(keys[i], (fan_out, fan_in), jnp.float32,
                               minval=-bound, maxval=bound)
        encode_w.append(w)
        encode_b.append(jnp.zeros((fan_out,), jnp.float32))
    rev = list(reversed(layer_sizes))
    decode_b = [jnp.zeros((rev[i + 1],), jnp.float32) for i in range(len(rev) - 1)]
    return encode_w, encode_b, decode_b


def autoencoder_forward_ref(x, encode_w, encode_b, decode_b, nl_type="selu",
                            last_layer_activations=True):
    last = len(encode_w) - 1
    h = x.astype(jnp.float32)
    for i, w in enumerate(encode_w):
        h = _apply_activation(h @ w.T + encode_b[i], nl_type)
    for i, w in enumerate(list(reversed(encode_w))):
        kind = nl_type if (i != last or last_layer_activations) else "none"
        h = _apply_activation(h @ w + decode_b[i], kind)
    return h


if __name__ == "__main__":
    layer_sizes = [64, 32, 16]   # feature 64, hidden 32, code 16

    key = jax.random.PRNGKey(0)
    k_params, k_x, k_x2 = jax.random.split(key, 3)
    encode_w, encode_b, decode_b = make_autoencoder_params(layer_sizes, k_params)

    params_flat, acts, pack, feat = pack_params(
        encode_w, encode_b, decode_b, layer_sizes,
        nl_type="selu", last_layer_activations=True)

    def check(out, ref, name):
        out32 = out.astype(jnp.float32)
        assert out.shape == ref.shape, (name, out.shape, ref.shape)
        assert bool(jnp.all(jnp.isfinite(out32))), name
        rel = float(jnp.linalg.norm(out32 - ref) / (jnp.linalg.norm(ref) + 1e-6))
        mx = float(jnp.max(jnp.abs(out32 - ref)))
        # bf16 slabs + bf16 MXU operands over 4 layers -> bf16-grade tolerances.
        assert rel < 0.05, (name, "rel_err", rel)
        assert mx < 0.3, (name, "max_abs_err", mx)

    # 1) Tiny batch: single block, grid = 1.
    x = jax.random.normal(k_x, (8, layer_sizes[0]), jnp.float32)
    out = jax.block_until_ready(
        autoencoder_forward(x, params_flat, acts, pack, feat))
    ref = autoencoder_forward_ref(x, encode_w, encode_b, decode_b)
    check(out, ref, "small_batch")

    # 2) Non-multiple batch: pads only to 16 slab rows (not a whole tile).
    x2 = jax.random.normal(k_x2, (1030, layer_sizes[0]), jnp.float32)
    out2 = jax.block_until_ready(
        autoencoder_forward(x2, params_flat, acts, pack, feat))
    ref2 = autoencoder_forward_ref(x2, encode_w, encode_b, decode_b)
    check(out2, ref2, "batch_1030")

    # 3) Same data, small max_tile: multi-step grid + ragged (masked) last block.
    out3 = jax.block_until_ready(
        autoencoder_forward(x2, params_flat, acts, pack, feat, max_tile=128))
    check(out3, ref2, "batch_1030_tiled")

    print("KERNEL_OK")
</pallas_src>

<mosaic_0001>
module attributes {stable_mosaic.version = 11 : i64} {
  func.func @fused_ae_kernel(%arg0: i32, %arg1: memref<16x128xbf16, #tpu.memory_space<vmem>>, %arg2: memref<128x64xbf16, #tpu.memory_space<vmem>>, %arg3: memref<1x64xf32, #tpu.memory_space<vmem>>, %arg4: memref<64x32xbf16, #tpu.memory_space<vmem>>, %arg5: memref<1x32xf32, #tpu.memory_space<vmem>>, %arg6: memref<32x64xbf16, #tpu.memory_space<vmem>>, %arg7: memref<1x64xf32, #tpu.memory_space<vmem>>, %arg8: memref<64x128xbf16, #tpu.memory_space<vmem>>, %arg9: memref<1x128xf32, #tpu.memory_space<vmem>>, %arg10: memref<16x128xbf16, #tpu.memory_space<vmem>>) attributes {dimension_semantics = [#tpu.dimension_semantics<parallel>], iteration_bounds = array<i64: 1>, scalar_prefetch = 0 : i64, scratch_operands = 0 : i64, tpu.core_type = #tpu.core_type<tc>, window_params = [{transform_indices = @transform_0, window_bounds = array<i64: 16, 128>}, {pipeline_mode = #tpu.pipeline_mode<synchronous>, transform_indices = @transform_1, window_bounds = array<i64: 128, 64>}, {pipeline_mode = #tpu.pipeline_mode<synchronous>, transform_indices = @transform_2, window_bounds = array<i64: 1, 64>}, {pipeline_mode = #tpu.pipeline_mode<synchronous>, transform_indices = @transform_3, window_bounds = array<i64: 64, 32>}, {pipeline_mode = #tpu.pipeline_mode<synchronous>, transform_indices = @transform_4, window_bounds = array<i64: 1, 32>}, {pipeline_mode = #tpu.pipeline_mode<synchronous>, transform_indices = @transform_5, window_bounds = array<i64: 32, 64>}, {pipeline_mode = #tpu.pipeline_mode<synchronous>, transform_indices = @transform_6, window_bounds = array<i64: 1, 64>}, {pipeline_mode = #tpu.pipeline_mode<synchronous>, transform_indices = @transform_7, window_bounds = array<i64: 64, 128>}, {pipeline_mode = #tpu.pipeline_mode<synchronous>, transform_indices = @transform_8, window_bounds = array<i64: 1, 128>}, {transform_indices = @transform_9, window_bounds = array<i64: 16, 128>}]} {
    %c0 = arith.constant 0 : index
    %c0_0 = arith.constant 0 : index
    %0 = vector.load %arg1[%c0, %c0_0] : memref<16x128xbf16, #tpu.memory_space<vmem>>, vector<16x128xbf16>
    %c0_1 = arith.constant 0 : index
    %c0_2 = arith.constant 0 : index
    %1 = vector.load %arg2[%c0_1, %c0_2] : memref<128x64xbf16, #tpu.memory_space<vmem>>, vector<128x64xbf16>
    %c0_3 = arith.constant 0 : index
    %c0_4 = arith.constant 0 : index
    %2 = vector.load %arg3[%c0_3, %c0_4] : memref<1x64xf32, #tpu.memory_space<vmem>>, vector<1x64xf32>
    %cst = arith.constant dense<0.000000e+00> : vector<16x64xf32>
    %3 = tpu.matmul %0, %1, %cst {dimension_numbers = #tpu.dot_dimension_numbers<[1], [0], [0], [1], [0, 0, 1, 1], [], []>} : vector<16x128xbf16>, vector<128x64xbf16>, vector<16x64xf32> -> vector<16x64xf32>
    %4 = vector.broadcast %2 : vector<1x64xf32> to vector<16x64xf32>
    %5 = arith.addf %3, %4 : vector<16x64xf32>
    %cst_5 = arith.constant 0.000000e+00 : f32
    %6 = vector.broadcast %cst_5 : f32 to vector<16x64xf32>
    %7 = arith.cmpf ogt, %5, %6 : vector<16x64xf32>
    %cst_6 = arith.constant 0.000000e+00 : f32
    %8 = vector.broadcast %cst_6 : f32 to vector<16x64xf32>
    %9 = arith.minimumf %5, %8 : vector<16x64xf32>
    %10 = math.exp %9 : vector<16x64xf32>
    %cst_7 = arith.constant 1.000000e+00 : f32
    %11 = vector.broadcast %cst_7 : f32 to vector<16x64xf32>
    %12 = arith.subf %10, %11 : vector<16x64xf32>
    %cst_8 = arith.constant 1.67326319 : f32
    %13 = vector.broadcast %cst_8 : f32 to vector<16x64xf32>
    %14 = arith.mulf %13, %12 : vector<16x64xf32>
    %15 = arith.select %7, %5, %14 : vector<16x64xi1>, vector<16x64xf32>
    %cst_9 = arith.constant 1.05070102 : f32
    %16 = vector.broadcast %cst_9 : f32 to vector<16x64xf32>
    %17 = arith.mulf %16, %15 : vector<16x64xf32>
    %c0_10 = arith.constant 0 : index
    %c0_11 = arith.constant 0 : index
    %18 = vector.load %arg4[%c0_10, %c0_11] : memref<64x32xbf16, #tpu.memory_space<vmem>>, vector<64x32xbf16>
    %c0_12 = arith.constant 0 : index
    %c0_13 = arith.constant 0 : index
    %19 = vector.load %arg5[%c0_12, %c0_13] : memref<1x32xf32, #tpu.memory_space<vmem>>, vector<1x32xf32>
    %20 = arith.truncf %17 : vector<16x64xf32> to vector<16x64xbf16>
    %cst_14 = arith.constant dense<0.000000e+00> : vector<16x32xf32>
    %21 = tpu.matmul %20, %18, %cst_14 {dimension_numbers = #tpu.dot_dimension_numbers<[1], [0], [0], [1], [0, 0, 1, 1], [], []>} : vector<16x64xbf16>, vector<64x32xbf16>, vector<16x32xf32> -> vector<16x32xf32>
    %22 = vector.broadcast %19 : vector<1x32xf32> to vector<16x32xf32>
    %23 = arith.addf %21, %22 : vector<16x32xf32>
    %cst_15 = arith.constant 0.000000e+00 : f32
    %24 = vector.broadcast %cst_15 : f32 to vector<16x32xf32>
    %25 = arith.cmpf ogt, %23, %24 : vector<16x32xf32>
    %cst_16 = arith.constant 0.000000e+00 : f32
    %26 = vector.broadcast %cst_16 : f32 to vector<16x32xf32>
    %27 = arith.minimumf %23, %26 : vector<16x32xf32>
    %28 = math.exp %27 : vector<16x32xf32>
    %cst_17 = arith.constant 1.000000e+00 : f32
    %29 = vector.broadcast %cst_17 : f32 to vector<16x32xf32>
    %30 = arith.subf %28, %29 : vector<16x32xf32>
    %cst_18 = arith.constant 1.67326319 : f32
    %31 = vector.broadcast %cst_18 : f32 to vector<16x32xf32>
    %32 = arith.mulf %31, %30 : vector<16x32xf32>
    %33 = arith.select %25, %23, %32 : vector<16x32xi1>, vector<16x32xf32>
    %cst_19 = arith.constant 1.05070102 : f32
    %34 = vector.broadcast %cst_19 : f32 to vector<16x32xf32>
    %35 = arith.mulf %34, %33 : vector<16x32xf32>
    %c0_20 = arith.constant 0 : index
    %c0_21 = arith.constant 0 : index
    %36 = vector.load %arg6[%c0_20, %c0_21] : memref<32x64xbf16, #tpu.memory_space<vmem>>, vector<32x64xbf16>
    %c0_22 = arith.constant 0 : index
    %c0_23 = arith.constant 0 : index
    %37 = vector.load %arg7[%c0_22, %c0_23] : memref<1x64xf32, #tpu.memory_space<vmem>>, vector<1x64xf32>
    %38 = arith.truncf %35 : vector<16x32xf32> to vector<16x32xbf16>
    %cst_24 = arith.constant dense<0.000000e+00> : vector<16x64xf32>
    %39 = tpu.matmul %38, %36, %cst_24 {dimension_numbers = #tpu.dot_dimension_numbers<[1], [0], [0], [1], [0, 0, 1, 1], [], []>} : vector<16x32xbf16>, vector<32x64xbf16>, vector<16x64xf32> -> vector<16x64xf32>
    %40 = vector.broadcast %37 : vector<1x64xf32> to vector<16x64xf32>
    %41 = arith.addf %39, %40 : vector<16x64xf32>
    %cst_25 = arith.constant 0.000000e+00 : f32
    %42 = vector.broadcast %cst_25 : f32 to vector<16x64xf32>
    %43 = arith.cmpf ogt, %41, %42 : vector<16x64xf32>
    %cst_26 = arith.constant 0.000000e+00 : f32
    %44 = vector.broadcast %cst_26 : f32 to vector<16x64xf32>
    %45 = arith.minimumf %41, %44 : vector<16x64xf32>
    %46 = math.exp %45 : vector<16x64xf32>
    %cst_27 = arith.constant 1.000000e+00 : f32
    %47 = vector.broadcast %cst_27 : f32 to vector<16x64xf32>
    %48 = arith.subf %46, %47 : vector<16x64xf32>
    %cst_28 = arith.constant 1.67326319 : f32
    %49 = vector.broadcast %cst_28 : f32 to vector<16x64xf32>
    %50 = arith.mulf %49, %48 : vector<16x64xf32>
    %51 = arith.select %43, %41, %50 : vector<16x64xi1>, vector<16x64xf32>
    %cst_29 = arith.constant 1.05070102 : f32
    %52 = vector.broadcast %cst_29 : f32 to vector<16x64xf32>
    %53 = arith.mulf %52, %51 : vector<16x64xf32>
    %c0_30 = arith.constant 0 : index
    %c0_31 = arith.constant 0 : index
    %54 = vector.load %arg8[%c0_30, %c0_31] : memref<64x128xbf16, #tpu.memory_space<vmem>>, vector<64x128xbf16>
    %c0_32 = arith.constant 0 : index
    %c0_33 = arith.constant 0 : index
    %55 = vector.load %arg9[%c0_32, %c0_33] : memref<1x128xf32, #tpu.memory_space<vmem>>, vector<1x128xf32>
    %56 = arith.truncf %53 : vector<16x64xf32> to vector<16x64xbf16>
    %cst_34 = arith.constant dense<0.000000e+00> : vector<16x128xf32>
    %57 = tpu.matmul %56, %54, %cst_34 {dimension_numbers = #tpu.dot_dimension_numbers<[1], [0], [0], [1], [0, 0, 1, 1], [], []>} : vector<16x64xbf16>, vector<64x128xbf16>, vector<16x128xf32> -> vector<16x128xf32>
    %58 = vector.broadcast %55 : vector<1x128xf32> to vector<16x128xf32>
    %59 = arith.addf %57, %58 : vector<16x128xf32>
    %cst_35 = arith.constant 0.000000e+00 : f32
    %60 = vector.broadcast %cst_35 : f32 to vector<16x128xf32>
    %61 = arith.cmpf ogt, %59, %60 : vector<16x128xf32>
    %cst_36 = arith.constant 0.000000e+00 : f32
    %62 = vector.broadcast %cst_36 : f32 to vector<16x128xf32>
    %63 = arith.minimumf %59, %62 : vector<16x128xf32>
    %64 = math.exp %63 : vector<16x128xf32>
    %cst_37 = arith.constant 1.000000e+00 : f32
    %65 = vector.broadcast %cst_37 : f32 to vector<16x128xf32>
    %66 = arith.subf %64, %65 : vector<16x128xf32>
    %cst_38 = arith.constant 1.67326319 : f32
    %67 = vector.broadcast %cst_38 : f32 to vector<16x128xf32>
    %68 = arith.mulf %67, %66 : vector<16x128xf32>
    %69 = arith.select %61, %59, %68 : vector<16x128xi1>, vector<16x128xf32>
    %cst_39 = arith.constant 1.05070102 : f32
    %70 = vector.broadcast %cst_39 : f32 to vector<16x128xf32>
    %71 = arith.mulf %70, %69 : vector<16x128xf32>
    %72 = arith.truncf %71 : vector<16x128xf32> to vector<16x128xbf16>
    %c0_40 = arith.constant 0 : index
    %c0_41 = arith.constant 0 : index
    %73 = vector.load %arg10[%c0_40, %c0_41] : memref<16x128xbf16, #tpu.memory_space<vmem>>, vector<16x128xbf16>
    tpu.vector_store %arg10[%c0_40, %c0_41], %72 {strides = array<i32>} : memref<16x128xbf16, #tpu.memory_space<vmem>>, vector<16x128xbf16>,
    return
  }
  func.func @transform_0(%arg0: i32) -> (i32, i32) {
    %c0_i32 = arith.constant 0 : i32
    %c0_i32_0 = arith.constant 0 : i32
    return %arg0, %c0_i32 : i32, i32
  }
  func.func @transform_1(%arg0: i32) -> (i32, i32) {
    %c0_i32 = arith.constant 0 : i32
    %c0_i32_0 = arith.constant 0 : i32
    %c0_i32_1 = arith.constant 0 : i32
    return %c0_i32, %c0_i32_0 : i32, i32
  }
  func.func @transform_2(%arg0: i32) -> (i32, i32) {
    %c0_i32 = arith.constant 0 : i32
    %c0_i32_0 = arith.constant 0 : i32
    %c0_i32_1 = arith.constant 0 : i32
    return %c0_i32, %c0_i32_0 : i32, i32
  }
  func.func @transform_3(%arg0: i32) -> (i32, i32) {
    %c0_i32 = arith.constant 0 : i32
    %c0_i32_0 = arith.constant 0 : i32
    %c0_i32_1 = arith.constant 0 : i32
    return %c0_i32, %c0_i32_0 : i32, i32
  }
  func.func @transform_4(%arg0: i32) -> (i32, i32) {
    %c0_i32 = arith.constant 0 : i32
    %c0_i32_0 = arith.constant 0 : i32
    %c0_i32_1 = arith.constant 0 : i32
    return %c0_i32, %c0_i32_0 : i32, i32
  }
  func.func @transform_5(%arg0: i32) -> (i32, i32) {
    %c0_i32 = arith.constant 0 : i32
    %c0_i32_0 = arith.constant 0 : i32
    %c0_i32_1 = arith.constant 0 : i32
    return %c0_i32, %c0_i32_0 : i32, i32
  }
  func.func @transform_6(%arg0: i32) -> (i32, i32) {
    %c0_i32 = arith.constant 0 : i32
    %c0_i32_0 = arith.constant 0 : i32
    %c0_i32_1 = arith.constant 0 : i32
    return %c0_i32, %c0_i32_0 : i32, i32
  }
  func.func @transform_7(%arg0: i32) -> (i32, i32) {
    %c0_i32 = arith.constant 0 : i32
    %c0_i32_0 = arith.constant 0 : i32
    %c0_i32_1 = arith.constant 0 : i32
    return %c0_i32, %c0_i32_0 : i32, i32
  }
  func.func @transform_8(%arg0: i32) -> (i32, i32) {
    %c0_i32 = arith.constant 0 : i32
    %c0_i32_0 = arith.constant 0 : i32
    %c0_i32_1 = arith.constant 0 : i32
    return %c0_i32, %c0_i32_0 : i32, i32
  }
  func.func @transform_9(%arg0: i32) -> (i32, i32) {
    %c0_i32 = arith.constant 0 : i32
    %c0_i32_0 = arith.constant 0 : i32
    return %arg0, %c0_i32 : i32, i32
  }
}

</mosaic_0001>

<bundles_post_ra>
// kernel: _fused_forward.1
= control target key start
LH: loop header
LB: loop body
LE: loop exit
PB: predicated region body
PF: predicated region fallthrough
CT: control target
= control target key end

     0   :  { %v623_v0 = vmov 0.0   ;;  %vm624_vm0 = vmmov 0   ;;  %vm209_vm3 = vcmask 523264   ;;  %vm294_vm6 = vcmask 261120   ;;  %s775_s1 = inlined_call_operand.vmem [shape: bf16[128,64], index: 1, kind: input, shape index: {}]   ;;  %s776_s0 = inlined_call_operand.vmem [shape: bf16[16,128], index: 0, kind: input, shape index: {}]   ;;  %s777_s3 = inlined_call_operand.vmem [shape: bf16[64,32], index: 3, kind: input, shape index: {}]   ;;  %s778_s2 = inlined_call_operand.vmem [shape: f32[1,64], index: 2, kind: input, shape index: {}]   ;;  %s779_s5 = inlined_call_operand.vmem [shape: bf16[32,64], index: 5, kind: input, shape index: {}]   ;;  %s780_s4 = inlined_call_operand.vmem [shape: f32[1,32], index: 4, kind: input, shape index: {}]   ;;  %s781_s7 = inlined_call_operand.vmem [shape: bf16[64,128], index: 7, kind: input, shape index: {}]   ;;  %s782_s6 = inlined_call_operand.vmem [shape: f32[1,64], index: 6, kind: input, shape index: {}]   ;;  %s783_s8 = inlined_call_operand.vmem [shape: f32[1,128], index: 8, kind: input, shape index: {}]   ;;  %s784_s9 = inlined_call_operand.vmem [shape: bf16[16,128], index: 9, kind: output, shape index: {}]  }
   0x1   :  { %534 = vmatprep.subr.bf16.mxu0 %v623_v0  ;;  %v588_v1 = vld [vmem:[%s775_s1 + $0x38] sm:$0xff]   ;;  %550 = vmatprep.mubr.msk.bf16.mxu0 %vm624_vm0, %v623_v0  ;;  %v589_v2 = vld [vmem:[%s775_s1 + $0x30] sm:$0xff]   ;;  %v590_v3 = vld [vmem:[%s775_s1 + $0x28] sm:$0xff]  }
   0x2   :  { %554 = vmatprep.subr.bf16.mxu1 %v623_v0  ;;  %562 = vmatprep.mubr.msk.bf16.mxu1 %vm624_vm0, %v623_v0  ;;  %v591_v4 = vld [vmem:[%s775_s1 + $0x20] sm:$0xff]   ;;  %v592_v5 = vld [vmem:[%s775_s1 + $0x18] sm:$0xff]   ;;  %v593_v6 = vld [vmem:[%s775_s1 + $0x10] sm:$0xff]  }
   0x3   :  { %535 = vmatpush3.bf16.msra.mxu0 %v588_v1  ;;  %v594_v7 = vld [vmem:[%s775_s1 + $0x8] sm:$0xff]   ;;  %v595_v8 = vld [vmem:[%s775_s1] sm:$0xff]   ;;  %v597_v10 = vld [vmem:[%s777_s3 + $0x18] sm:$0xff]  }
   0x4   :  { %536 = vmatprep.subr.bf16.mxu0 %v623_v0  ;;  %v596_v9 = vld [vmem:[%s776_s0] sm:$0xff]   ;;  %555 = vmatpush3.bf16.msra.mxu1 %v597_v10  ;;  %v598_v11 = vld [vmem:[%s777_s3 + $0x10] sm:$0xff]   ;;  %v599_v12 = vld [vmem:[%s777_s3 + $0x8] sm:$0xff]  }
   0x5   :  { %556 = vmatprep.subr.bf16.mxu1 %v623_v0  ;;  %v600_v13 = vld [vmem:[%s777_s3] sm:$0xff]   ;;  %v601_v36 = vld [vmem:[%s779_s5 + $0x8] sm:$0xff]   ;;  %v603_v60 = vld [vmem:[%s781_s7 + $0x18] sm:$0xff]  }
   0x6   :  { %v469_v14 = vld [vmem:[%s778_s2] ss:$0 sm:$0xff]  ;;  %v604_v61 = vld [vmem:[%s781_s7 + $0x10] sm:$0xff]   ;;  %v605_v62 = vld [vmem:[%s781_s7 + $0x8] sm:$0xff]  }
   0x7   :  { %537 = vmatpush3.bf16.msra.mxu0 %v589_v2  ;;  %v602_v37 = vld [vmem:[%s779_s5] sm:$0xff]  }
   0x8   :  { %538 = vmatprep.subr.bf16.mxu0 %v623_v0  ;;  %557 = vmatpush3.bf16.msra.mxu1 %v598_v11  ;;  %v481_v38 = vld [vmem:[%s780_s4] ss:$0 sm:$0xff] }
   0x9   :  { %558 = vmatprep.subr.bf16.mxu1 %v623_v0  ;;  %v606_v63 = vld [vmem:[%s781_s7] sm:$0xff]  }
   0xa   :  { %v489_v1 = vld [vmem:[%s782_s6] ss:$0 sm:$0xff] }
   0xb   :  { %539 = vmatpush3.bf16.msra.mxu0 %v590_v3 }
   0xc   :  { %540 = vmatprep.subr.bf16.mxu0 %v623_v0  ;;  %559 = vmatpush3.bf16.msra.mxu1 %v599_v12 }
   0xd   :  { %560 = vmatprep.subr.bf16.mxu1 %v623_v0 }
   0xf   :  { %541 = vmatpush3.bf16.msra.mxu0 %v591_v4 }
  0x10   :  { %542 = vmatprep.subr.bf16.mxu0 %v623_v0  ;;  %561 = vmatpush3.bf16.msra.mxu1 %v600_v13 }
  0x11   :  { %566 = vmatprep.subr.bf16.mxu1 %v623_v0 }
  0x13   :  { %543 = vmatpush3.bf16.msra.mxu0 %v592_v5 }
  0x14   :  { %544 = vmatprep.subr.bf16.mxu0 %v623_v0 }
  0x17   :  { %545 = vmatpush3.bf16.msra.mxu0 %v593_v6 }
  0x18   :  { %546 = vmatprep.subr.bf16.mxu0 %v623_v0 }
  0x1b   :  { %547 = vmatpush3.bf16.msra.mxu0 %v594_v7 }
  0x1c   :  { %548 = vmatprep.subr.bf16.mxu0 %v623_v0 }
  0x1f   :  { %549 = vmatpush3.bf16.msra.mxu0 %v595_v8 }
  0x22   :  { %551 = vmatmul.mubr.bf16.vlgmr.msra.gmra.mxu0 %v596_v9 }
  0xe2   :  { %v146_v15 = vpop.f32.mrf.mxu0 }
  0xe3   :  { %v147_v16 = vadd.f32 %v469_v14, %v146_v15 }
  0xe4   :  { %v552_v17 = vpop.f32.mrf.mxu0 }
  0xe5   :  { %v155_v18 = vmin.f32 %v147_v16, 0.0  ;;  %vm153_vm1 = vcmp.gt.f32.partialorder %v147_v16, 0.0 }
  0xe6   :  { %v149_v19 = vpop.f32.mrf.mxu0 }
  0xe7   :  { %v157_v20 = vmul.f32 1.442695, %v155_v18  ;;  %v150_v21 = vadd.f32 %v469_v14, %v149_v19 }
  0xe8   :  { %v553_v22 = vpop.f32.mrf.mxu0 }
  0xe9   :  { %607 = vpow2.f32 %v157_v20  ;;  %v156_v23 = vmin.f32 %v150_v21, 0.0  ;;  %vm154_vm2 = vcmp.gt.f32.partialorder %v150_v21, 0.0  ;;  %v495_v22 = vld [vmem:[%s783_s8] ss:$0 sm:$0xff] }
  0xeb   :  { %v159_v24 = vmul.f32 1.442695, %v156_v23 }
  0xed   :  { %609 = vpow2.f32 %v159_v24 }
  0xf6   :  { %v608_v25 = vpop.eup %607 }
  0xf7   :  { %v479_v26 = vadd.f32 -1.0, %v608_v25 }
  0xf9   :  { %v163_v27 = vmul.f32 1.6732632, %v479_v26 }
  0xfa   :  { %v610_v28 = vpop.eup %609 }
  0xfb   :  { %v480_v29 = vadd.f32 -1.0, %v610_v28  ;;  %v165_v30 = vsel %vm153_vm1, %v147_v16, %v163_v27 }
  0xfc   :  { %v167_v33 = vmul.f32 1.050701, %v165_v30 }
  0xfd   :  { %v164_v31 = vmul.f32 1.6732632, %v480_v29 }
  0xff   :  { %v166_v32 = vsel %vm154_vm2, %v150_v21, %v164_v31 }
 0x100   :  { %v168_v34 = vmul.f32 1.050701, %v166_v32 }
 0x102   :  { %v178_v35 = vpack.c.bf16 %v168_v34, %v167_v33 }
 0x104   :  { %563 = vmatmul.mubr.msk.bf16.vlgmr.msra.gmra.mxu1 %vm209_vm3, %v178_v35 }
 0x105   :  { %570 = vmatprep.mubr.msk.bf16.mxu1 %vm624_vm0, %v623_v0  ;;  %567 = vmatpush3.bf16.msra.mxu1 %v601_v36 }
 0x106   :  { %568 = vmatprep.subr.bf16.mxu1 %v623_v0 }
 0x109   :  { %569 = vmatpush3.bf16.msra.mxu1 %v602_v37 }
 0x10a   :  { %574 = vmatprep.subr.bf16.mxu1 %v623_v0 }
 0x1c4   :  { %v247_v39 = vpop.f32.mrf.mxu1 }
 0x1c5   :  { %v248_v40 = vadd.f32 %v481_v38, %v247_v39 }
 0x1c6   :  { %v564_v41 = vpop.f32.mrf.mxu1 }
 0x1c7   :  { %v256_v42 = vmin.f32 %v248_v40, 0.0  ;;  %vm254_vm4 = vcmp.gt.f32.partialorder %v248_v40, 0.0 }
 0x1c8   :  { %v250_v43 = vpop.f32.mrf.mxu1 }
 0x1c9   :  { %v258_v44 = vmul.f32 1.442695, %v256_v42  ;;  %v251_v45 = vadd.f32 %v481_v38, %v250_v43 }
 0x1ca   :  { %v565_v46 = vpop.f32.mrf.mxu1 }
 0x1cb   :  { %611 = vpow2.f32 %v258_v44  ;;  %v257_v47 = vmin.f32 %v251_v45, 0.0  ;;  %vm255_vm5 = vcmp.gt.f32.partialorder %v251_v45, 0.0 }
 0x1cd   :  { %v260_v48 = vmul.f32 1.442695, %v257_v47 }
 0x1cf   :  { %613 = vpow2.f32 %v260_v48 }
 0x1d8   :  { %v612_v49 = vpop.eup %611 }
 0x1d9   :  { %v487_v50 = vadd.f32 -1.0, %v612_v49 }
 0x1db   :  { %v264_v51 = vmul.f32 1.6732632, %v487_v50 }
 0x1dc   :  { %v614_v52 = vpop.eup %613 }
 0x1dd   :  { %v488_v53 = vadd.f32 -1.0, %v614_v52  ;;  %v266_v54 = vsel %vm254_vm4, %v248_v40, %v264_v51 }
 0x1de   :  { %v268_v57 = vmul.f32 1.050701, %v266_v54 }
 0x1df   :  { %v265_v55 = vmul.f32 1.6732632, %v488_v53 }
 0x1e1   :  { %v267_v56 = vsel %vm255_vm5, %v251_v45, %v265_v55 }
 0x1e2   :  { %v269_v58 = vmul.f32 1.050701, %v267_v56 }
 0x1e4   :  { %v275_v59 = vpack.c.bf16 %v269_v58, %v268_v57 }
 0x1e6   :  { %571 = vmatmul.mubr.msk.bf16.vlgmr.msra.gmra.mxu1 %vm294_vm6, %v275_v59 }
 0x1e7   :  { %582 = vmatprep.mubr.msk.bf16.mxu1 %vm624_vm0, %v623_v0  ;;  %575 = vmatpush3.bf16.msra.mxu1 %v603_v60 }
 0x1e8   :  { %576 = vmatprep.subr.bf16.mxu1 %v623_v0 }
 0x1eb   :  { %577 = vmatpush3.bf16.msra.mxu1 %v604_v61 }
 0x1ec   :  { %578 = vmatprep.subr.bf16.mxu1 %v623_v0 }
 0x1ef   :  { %579 = vmatpush3.bf16.msra.mxu1 %v605_v62 }
 0x1f0   :  { %580 = vmatprep.subr.bf16.mxu1 %v623_v0 }
 0x1f3   :  { %581 = vmatpush3.bf16.msra.mxu1 %v606_v63 }
 0x2a6   :  { %v332_v2 = vpop.f32.mrf.mxu1 }
 0x2a7   :  { %v333_v3 = vadd.f32 %v489_v1, %v332_v2 }
 0x2a8   :  { %v572_v4 = vpop.f32.mrf.mxu1 }
 0x2a9   :  { %v341_v5 = vmin.f32 %v333_v3, 0.0  ;;  %vm339_vm7 = vcmp.gt.f32.partialorder %v333_v3, 0.0 }
 0x2aa   :  { %v335_v6 = vpop.f32.mrf.mxu1 }
 0x2ab   :  { %v343_v7 = vmul.f32 1.442695, %v341_v5  ;;  %v336_v8 = vadd.f32 %v489_v1, %v335_v6 }
 0x2ac   :  { %v573_v9 = vpop.f32.mrf.mxu1 }
 0x2ad   :  { %615 = vpow2.f32 %v343_v7  ;;  %v342_v10 = vmin.f32 %v336_v8, 0.0  ;;  %vm340_vm8 = vcmp.gt.f32.partialorder %v336_v8, 0.0 }
 0x2af   :  { %v345_v0 = vmul.f32 1.442695, %v342_v10 }
 0x2b1   :  { %617 = vpow2.f32 %v345_v0 }
 0x2ba   :  { %v616_v11 = vpop.eup %615 }
 0x2bb   :  { %v493_v12 = vadd.f32 -1.0, %v616_v11 }
 0x2bd   :  { %v349_v13 = vmul.f32 1.6732632, %v493_v12 }
 0x2be   :  { %v618_v14 = vpop.eup %617 }
 0x2bf   :  { %v494_v15 = vadd.f32 -1.0, %v618_v14  ;;  %v351_v16 = vsel %vm339_vm7, %v333_v3, %v349_v13 }
 0x2c0   :  { %v353_v19 = vmul.f32 1.050701, %v351_v16 }
 0x2c1   :  { %v350_v17 = vmul.f32 1.6732632, %v494_v15 }
 0x2c3   :  { %v352_v18 = vsel %vm340_vm8, %v336_v8, %v350_v17 }
 0x2c4   :  { %v354_v20 = vmul.f32 1.050701, %v352_v18 }
 0x2c6   :  { %v364_v21 = vpack.c.bf16 %v354_v20, %v353_v19 }
 0x2c8   :  { %583 = vmatmul.mubr.msk.bf16.vlgmr.msra.gmra.mxu1 %vm209_vm3, %v364_v21 }
 0x388   :  { %v432_v23 = vpop.f32.mrf.mxu1 }
 0x389   :  { %v433_v24 = vadd.f32 %v495_v22, %v432_v23 }
 0x38a   :  { %v584_v25 = vpop.f32.mrf.mxu1 }
 0x38b   :  { %v441_v26 = vmin.f32 %v433_v24, 0.0  ;;  %vm439_vm9 = vcmp.gt.f32.partialorder %v433_v24, 0.0 }
 0x38c   :  { %v435_v27 = vpop.f32.mrf.mxu1 }
 0x38d   :  { %v443_v28 = vmul.f32 1.442695, %v441_v26  ;;  %v436_v29 = vadd.f32 %v495_v22, %v435_v27 }
 0x38e   :  { %v585_v30 = vpop.f32.mrf.mxu1 }
 0x38f   :  { %619 = vpow2.f32 %v443_v28  ;;  %v442_v31 = vmin.f32 %v436_v29, 0.0  ;;  %vm440_vm10 = vcmp.gt.f32.partialorder %v436_v29, 0.0 }
 0x391   :  { %v445_v32 = vmul.f32 1.442695, %v442_v31 }
 0x393   :  { %621 = vpow2.f32 %v445_v32 }
 0x39c   :  { %v620_v33 = vpop.eup %619 }
 0x39d   :  { %v501_v34 = vadd.f32 -1.0, %v620_v33 }
 0x39f   :  { %v449_v35 = vmul.f32 1.6732632, %v501_v34 }
 0x3a0   :  { %v622_v36 = vpop.eup %621 }
 0x3a1   :  { %v502_v37 = vadd.f32 -1.0, %v622_v36  ;;  %v451_v38 = vsel %vm439_vm9, %v433_v24, %v449_v35 }
 0x3a2   :  { %v453_v41 = vmul.f32 1.050701, %v451_v38 }
 0x3a3   :  { %v450_v39 = vmul.f32 1.6732632, %v502_v37 }
 0x3a5   :  { %v452_v40 = vsel %vm440_vm10, %v436_v29, %v450_v39 }
 0x3a6   :  { %v454_v42 = vmul.f32 1.050701, %v452_v40 }
 0x3a8   :  { %v510_v43 = vpack.c.bf16 %v454_v42, %v453_v41 }
 0x3aa   :  { %511 = vst [vmem:[%s784_s9] sm:$0xff] %v510_v43  }

</bundles_post_ra>
